<compile_context>
chip_gen: v7x
topology: tpu7x:2x2x1
jax: 0.10.0
libtpu: 0.0.40
codegen_flags: <defaults>
</compile_context>

<pallas_src>
import jax
import jax.numpy as jnp
from jax.experimental import pallas as pl
from jax.experimental.pallas import tpu as pltpu

_LANES = 128


def _round_up(x, m):
    return ((x + m - 1) // m) * m


def _scale_kernel(w_ref, x_ref, o_ref):
    # w_ref: (1, 1) weight in SMEM.  x_ref / o_ref: (tile_r, 128) tiles in VMEM.
    # Pure VPU broadcast multiply; the kernel is HBM-bandwidth bound.
    w = w_ref[0, 0]
    o_ref[...] = x_ref[...] * w


def discriminator_forward(noise, weight, *, tile_rows=512):
    """noise: (B, 1), weight: (1, 1) -> (B, 1).

    Same semantics as nn.Linear(1, 1, bias=False):
        out = noise @ weight.T == noise * weight[0, 0]
    """
    B, F = noise.shape
    assert F == 1 and weight.shape == (1, 1)
    dtype = noise.dtype

    # Lane-dense layout: flatten the batch and view it as (rows, 128).
    rows = -(-B // _LANES)                          # ceil(B / 128)
    tile_r = min(int(tile_rows), _round_up(rows, 8))
    rows_padded = _round_up(rows, tile_r)
    total = rows_padded * _LANES

    x2d = jnp.pad(jnp.ravel(noise), (0, total - B)).reshape(rows_padded, _LANES)

    out2d = pl.pallas_call(
        _scale_kernel,
        out_shape=jax.ShapeDtypeStruct((rows_padded, _LANES), dtype),
        grid_spec=pltpu.PrefetchScalarGridSpec(
            num_scalar_prefetch=0,
            grid=(rows_padded // tile_r,),
            in_specs=[
                # 4-byte weight on the scalar path (SMEM); no VMEM tile /
                # double-buffering / per-step DMA for it.
                pl.BlockSpec(memory_space=pltpu.MemorySpace.SMEM),
                pl.BlockSpec((tile_r, _LANES), lambda i: (i, 0)),
            ],
            out_specs=pl.BlockSpec((tile_r, _LANES), lambda i: (i, 0)),
        ),
        compiler_params=pltpu.CompilerParams(
            # Independent elementwise tiles -> shard across TensorCores (v7x).
            dimension_semantics=("parallel",),
        ),
    )(weight.astype(dtype), x2d)

    return out2d.reshape(-1)[:B].reshape(B, 1)


if __name__ == "__main__":
    key = jax.random.PRNGKey(0)
    k_w, k_x, k_x2 = jax.random.split(key, 3)

    # nn.Linear(1, 1) default init: U(-1/sqrt(in_features), +1/sqrt(in_features)) = U(-1, 1)
    weight = jax.random.uniform(k_w, (1, 1), jnp.float32, minval=-1.0, maxval=1.0)

    # Tiny batch (matches the module's typical usage).
    batch = 8
    noise = jax.random.normal(k_x, (batch, 1), jnp.float32)
    out = jax.block_until_ready(discriminator_forward(noise, weight))
    ref = noise @ weight.T
    assert out.shape == (batch, 1)
    assert jnp.allclose(out, ref, atol=1e-6), (out, ref)

    # Larger, lane-unaligned batch to exercise padding + multi-tile grid.
    batch2 = 2065
    noise2 = jax.random.normal(k_x2, (batch2, 1), jnp.float32)
    out2 = jax.block_until_ready(
        discriminator_forward(noise2, weight, tile_rows=8)
    )
    ref2 = noise2 @ weight.T
    assert out2.shape == (batch2, 1)
    assert jnp.allclose(out2, ref2, atol=1e-6)

    print("KERNEL_OK")
</pallas_src>

<mosaic_0001>
module attributes {stable_mosaic.version = 11 : i64} {
  func.func @_scale_kernel(%arg0: i32, %arg1: memref<1x1xf32, #tpu.memory_space<smem>>, %arg2: memref<8x128xf32, #tpu.memory_space<vmem>>, %arg3: memref<8x128xf32, #tpu.memory_space<vmem>>) attributes {dimension_semantics = [#tpu.dimension_semantics<parallel>], iteration_bounds = array<i64: 1>, scalar_prefetch = 0 : i64, scratch_operands = 0 : i64, tpu.core_type = #tpu.core_type<tc>, window_params = [{transform_indices = @transform_0, window_bounds = array<i64: 1, 1>}, {transform_indices = @transform_1, window_bounds = array<i64: 8, 128>}, {transform_indices = @transform_2, window_bounds = array<i64: 8, 128>}]} {
    %c0 = arith.constant 0 : index
    %c0_0 = arith.constant 0 : index
    %0 = memref.load %arg1[%c0, %c0_0] : memref<1x1xf32, #tpu.memory_space<smem>>
    %c0_1 = arith.constant 0 : index
    %c0_2 = arith.constant 0 : index
    %1 = vector.load %arg2[%c0_1, %c0_2] : memref<8x128xf32, #tpu.memory_space<vmem>>, vector<8x128xf32>
    %2 = vector.broadcast %0 : f32 to vector<8x128xf32>
    %3 = arith.mulf %1, %2 : vector<8x128xf32>
    %c0_3 = arith.constant 0 : index
    %c0_4 = arith.constant 0 : index
    %4 = vector.load %arg3[%c0_3, %c0_4] : memref<8x128xf32, #tpu.memory_space<vmem>>, vector<8x128xf32>
    tpu.vector_store %arg3[%c0_3, %c0_4], %3 {strides = array<i32>} : memref<8x128xf32, #tpu.memory_space<vmem>>, vector<8x128xf32>,
    return
  }
  func.func @transform_0(%arg0: i32) -> (i32, i32) {
    %c0_i32 = arith.constant 0 : i32
    %c0_i32_0 = arith.constant 0 : i32
    %c0_i32_1 = arith.constant 0 : i32
    return %c0_i32, %c0_i32_0 : i32, i32
  }
  func.func @transform_1(%arg0: i32) -> (i32, i32) {
    %c0_i32 = arith.constant 0 : i32
    %c0_i32_0 = arith.constant 0 : i32
    return %arg0, %c0_i32 : i32, i32
  }
  func.func @transform_2(%arg0: i32) -> (i32, i32) {
    %c0_i32 = arith.constant 0 : i32
    %c0_i32_0 = arith.constant 0 : i32
    return %arg0, %c0_i32 : i32, i32
  }
}

</mosaic_0001>

<bundles_post_ra>
// kernel: tpu_custom_call.1
= control target key start
LH: loop header
LB: loop body
LE: loop exit
PB: predicated region body
PF: predicated region fallthrough
CT: control target
= control target key end

     0   :  { %8 = vsyncpa [#allocation4], 0  ;;  %s139_s0 = inlined_call_operand.<no memory space> [shape: f32[1,1], index: 0, kind: input, shape index: {}]   ;;  %s140_s1 = inlined_call_operand.hbm [shape: f32[8,128], index: 1, kind: input, shape index: {}]   ;;  %s141_s2 = inlined_call_operand.hbm [shape: f32[8,128], index: 2, kind: output, shape index: {}]  }
   0x1   :  { %9 = vsyncpa [#allocation5], 0  ;;  %s95_s9 = smov [#allocation3]   ;;  %s47_s13 = scalar_lea.hbm %s140_s1, 128 }
   0x2   :  { %s18_s10 = sshll.u32 %s95_s9, 4  ;;  %p48_p0 = scmp.ne.s32.totalorder %s140_s1, %s47_s13  ;;  %s19_s10 = int_to_ptr.vmem [resolvable:$true] %s18_s10 }
   0x3   :  { %p51_p1 = scmp.lt.u32.totalorder %s47_s13, %s140_s1 }
   0x5   :  { %p53_p2 = pnand %p51_p1, %p48_p0 }
   0x7   :  { %56 = shalt.err (!%p53_p2)
}
   0x8   :  { %s57_s18 = scalar_lea.vmem %s19_s10, 128  ;;  %p62_p4 = scmp.lt.s32.totalorder %s19_s10, %s19_s10 }
   0x9   :  { %p58_p3 = scmp.ne.s32.totalorder %s19_s10, %s57_s18  ;;  %p63_p5 = scmp.lt.s32.totalorder %s57_s18, %s57_s18 }
   0xb   :  { %p64_p6 = por %p63_p5, %p62_p4 }
   0xd   :  { %p65_p7 = pnand %p64_p6, %p58_p3 }
   0xf   :  { %68 = shalt.err (!%p65_p7)
}
  0x10   :  { %21 = dma.hbm_to_vmem [thread:$0]  %s140_s1, 128, %s19_s10, [#allocation4]  }
  0x11   :  { %91 = dma.done.wait [#allocation4], 128  }
  0x12   :  { %92 = vsyncadd [#allocation4], 4294967168  ;;  %v27_v0 = vstv %s139_s0  ;;  %s96_s23 = smov [#allocation6]   ;;  %v26_v1 = vld [vmem:[#allocation3] sm:$0xff] }
  0x13   :  { %s36_s24 = sshll.u32 %s96_s23, 4  ;;  %v28_v2 = vmul.f32 %v27_v0, %v26_v1  ;;  %s37_s24 = int_to_ptr.vmem [resolvable:$true] %s36_s24 }
  0x14   :  { %s69_s25 = scalar_lea.vmem %s37_s24, 128  ;;  %p74_p9 = scmp.lt.s32.totalorder %s37_s24, %s37_s24 }
  0x15   :  { %29 = vst [vmem:[#allocation6] sm:$0xff] %v28_v2  ;;  %p70_p8 = scmp.ne.s32.totalorder %s37_s24, %s69_s25  ;;  %p75_p10 = scmp.lt.s32.totalorder %s69_s25, %s69_s25 }
  0x17   :  { %p76_p11 = por %p75_p10, %p74_p9 }
  0x19   :  { %p77_p12 = pnand %p76_p11, %p70_p8 }
  0x1b   :  { %80 = shalt.err (!%p77_p12)
}
  0x1c   :  { %s81_s27 = scalar_lea.hbm %s141_s2, 128 }
  0x1d   :  { %p82_p13 = scmp.ne.s32.totalorder %s141_s2, %s81_s27  ;;  %p85_p0 = scmp.lt.u32.totalorder %s81_s27, %s141_s2 }
  0x1f   :  { %p87_p1 = pnand %p85_p0, %p82_p13 }
  0x21   :  { %90 = shalt.err (!%p87_p1)
}
  0x22   :  { %39 = dma.vmem_to_hbm [thread:$0]  %s37_s24, 128, %s141_s2, [#allocation5]  }
  0x23   :  { %93 = dma.done.wait [#allocation5], 128  }
  0x24   :  { %94 = vsyncadd [#allocation5], 4294967168 }
  0x25   :  { %43 = vsyncpa [#allocation4], 1 }
  0x26   :  { %44 = vsyncpa [#allocation5], 1 }

</bundles_post_ra>
